<compile_context>
chip_gen: v5e
topology: v5e:2x2
jax: 0.10.0
libtpu: 0.0.40
codegen_flags: <defaults>
</compile_context>

<pallas_src>
import functools

import jax
import jax.numpy as jnp
from jax.experimental import pallas as pl
from jax.experimental.pallas import tpu as pltpu

EPS = 1e-5        # PyTorch BatchNorm1d default eps
FEAT_DIM = 128    # stand-in trunk output channels (real ResNet-101 fc.in_features = 2048)


def _k_pack(in_channels):
    """Packed im2col contraction width: 9 taps * Cin + 1 bias column, rounded up."""
    return max(32, -(-(9 * in_channels + 1) // 8) * 8)


def _e_pad(embed_size):
    """Embedding dim padded to a full 128-lane width for lane-dense stores."""
    return -(-embed_size // 128) * 128


# ---------------------------------------------------------------------------
# Stage 1 kernel: 3x3 "same" conv (single packed im2col matmul) + ReLU + avg pool.
# Grid = (batch, row-chunk). Batch is "parallel" (megacore-safe); the chunk axis
# accumulates into the resident f32 output block.
# ---------------------------------------------------------------------------
def _conv_pool_kernel(p_ref, w_ref, o_ref, *, inv_hw):
    # p_ref: [1, TILE_M, KP] bf16 im2col patches (bias ones-column folded in;
    #        zero-padded M rows stay exactly zero through ReLU -> no pooling bias)
    # w_ref: [KP, C]         bf16 packed conv weight (+ bias row, + zero pad rows)
    # o_ref: [1, 1, C]       f32 pooled feature row, resident across the chunk axis
    c = pl.program_id(1)

    @pl.when(c == 0)
    def _():
        o_ref[...] = jnp.zeros_like(o_ref)

    fmap = jnp.dot(p_ref[0], w_ref[...],
                   preferred_element_type=jnp.float32)        # [TILE_M, C] on the MXU
    fmap = jnp.maximum(fmap, 0.0)                             # ReLU (bias already folded in)
    psum = jnp.sum(fmap, axis=0, keepdims=True)               # [1, C]
    o_ref[...] = o_ref[...] + psum[None]

    @pl.when(c == pl.num_programs(1) - 1)
    def _():
        o_ref[...] = o_ref[...] * inv_hw                      # spatial mean == avg-pool 1x1


# ---------------------------------------------------------------------------
# Stage 2 kernel: Linear -> BatchNorm1d (training-mode batch statistics).
# ---------------------------------------------------------------------------
def _linear_bn_kernel(p_ref, wl_ref, bl_ref, g_ref, be_ref, o_ref):
    # p_ref: [B, C] f32 pooled; wl_ref: [C, EP]; bl/g/be: [1, EP]; o_ref: [B, EP]
    y = jnp.dot(p_ref[...], wl_ref[...],
                preferred_element_type=jnp.float32) + bl_ref[...]
    mu = jnp.mean(y, axis=0, keepdims=True)
    var = jnp.mean(jnp.square(y - mu), axis=0, keepdims=True)   # biased batch variance
    o_ref[...] = (y - mu) * jax.lax.rsqrt(var + EPS) * g_ref[...] + be_ref[...]


# ---------------------------------------------------------------------------
# pallas_call wrappers
# ---------------------------------------------------------------------------
def _conv_pool_call(patches, w_pack, hw, tile_m):
    B, m_pad, kp = patches.shape
    C = w_pack.shape[1]
    n_chunks = m_pad // tile_m

    cost = pl.CostEstimate(
        flops=2 * B * m_pad * kp * C,
        transcendentals=0,
        bytes_accessed=patches.size * 2 + w_pack.size * 2 + B * C * 4,
    )
    # VMEM derived from actual block sizes (review: don't hard-code 32 MiB on v7x):
    # double-buffered patch slab + double-buffered weight + output block + f32 fmap.
    vmem_bytes = (2 * tile_m * kp * 2) + (2 * kp * C * 2) + (2 * C * 4) + (tile_m * C * 4)
    vmem_limit = int(max(8 * 1024 * 1024, 2 * vmem_bytes))

    grid_spec = pltpu.PrefetchScalarGridSpec(
        num_scalar_prefetch=0,
        grid=(B, n_chunks),
        in_specs=[
            pl.BlockSpec((1, tile_m, kp), lambda b, c: (b, c, 0)),  # patch slab per step
            pl.BlockSpec((kp, C), lambda b, c: (0, 0)),             # packed weight (resident)
        ],
        out_specs=pl.BlockSpec((1, 1, C), lambda b, c: (b, 0, 0)),  # pooled row (accumulator)
    )
    pooled = pl.pallas_call(
        functools.partial(_conv_pool_kernel, inv_hw=1.0 / float(hw)),
        out_shape=jax.ShapeDtypeStruct((B, 1, C), jnp.float32),
        grid_spec=grid_spec,
        compiler_params=pltpu.CompilerParams(
            dimension_semantics=("parallel", "arbitrary"),
            vmem_limit_bytes=vmem_limit,
        ),
        cost_estimate=cost,
    )(patches, w_pack)
    return pooled.reshape(B, C)


def _linear_bn_call(pooled, w_lin, b_lin, gamma, beta):
    B, C = pooled.shape
    ep = w_lin.shape[1]
    grid_spec = pltpu.PrefetchScalarGridSpec(
        num_scalar_prefetch=0,
        grid=(1,),
        in_specs=[
            pl.BlockSpec((B, C), lambda i: (0, 0)),
            pl.BlockSpec((C, ep), lambda i: (0, 0)),
            pl.BlockSpec((1, ep), lambda i: (0, 0)),
            pl.BlockSpec((1, ep), lambda i: (0, 0)),
            pl.BlockSpec((1, ep), lambda i: (0, 0)),
        ],
        out_specs=pl.BlockSpec((B, ep), lambda i: (0, 0)),
    )
    return pl.pallas_call(
        _linear_bn_kernel,
        out_shape=jax.ShapeDtypeStruct((B, ep), jnp.float32),
        grid_spec=grid_spec,
        compiler_params=pltpu.CompilerParams(dimension_semantics=("arbitrary",)),
    )(pooled, w_lin, b_lin, gamma, beta)


# ---------------------------------------------------------------------------
# Glue (plain JAX): NCHW -> lane-friendly im2col patches, parameter setup
# ---------------------------------------------------------------------------
def _im2col_patches(images_nchw, k_pack):
    """NCHW f32 -> bf16 im2col patches [B, M_pad, k_pack], plus (H*W, tile_m)."""
    B, cin, H, W = images_nchw.shape
    x = jnp.transpose(images_nchw, (0, 2, 3, 1))                       # NHWC
    xp = jnp.pad(x, ((0, 0), (1, 1), (1, 1), (0, 0)))                  # 3x3 'same' halo
    taps = [xp[:, dh:dh + H, dw:dw + W, :] for dh in range(3) for dw in range(3)]
    patches = jnp.concatenate(taps, axis=-1).reshape(B, H * W, 9 * cin)
    ones = jnp.ones((B, H * W, 1), patches.dtype)                      # bias column
    patches = jnp.concatenate([patches, ones], axis=-1)
    patches = jnp.pad(patches, ((0, 0), (0, 0), (0, k_pack - patches.shape[-1])))

    hw = H * W
    tile_m = min(1024, -(-hw // 8) * 8)        # rows per chunk, multiple of 8, <= 1024
    m_pad = -(-hw // tile_m) * tile_m
    patches = jnp.pad(patches, ((0, 0), (0, m_pad - hw), (0, 0)))      # all-zero pad rows
    return patches.astype(jnp.bfloat16), hw, tile_m


def init_params(key, in_channels=3, embed_size=32, feat_dim=FEAT_DIM):
    k1, k2, k3, k4 = jax.random.split(key, 4)
    kp = _k_pack(in_channels)
    ep = _e_pad(embed_size)

    # Stand-in 3x3 conv stem replacing the pretrained trunk.
    # TODO(synk): pretrained ResNet-101 backbone is not translatable here.
    w_conv = 0.1 * jax.random.normal(k1, (3, 3, in_channels, feat_dim), jnp.float32)
    b_conv = 0.1 * jax.random.normal(k2, (feat_dim,), jnp.float32)
    w_pack = jnp.zeros((kp, feat_dim), jnp.float32)
    w_pack = w_pack.at[:9 * in_channels].set(w_conv.reshape(9 * in_channels, feat_dim))
    w_pack = w_pack.at[9 * in_channels].set(b_conv)      # bias row (pairs with ones-column)
    w_pack = w_pack.astype(jnp.bfloat16)

    # nn.Linear(feat, embed) stored transposed, columns padded to a full lane width.
    w_lin = 0.1 * jax.random.normal(k3, (feat_dim, embed_size), jnp.float32)
    b_lin = 0.1 * jax.random.normal(k4, (embed_size,), jnp.float32)
    w_lin_p = jnp.zeros((feat_dim, ep), jnp.float32).at[:, :embed_size].set(w_lin)
    b_lin_p = jnp.zeros((1, ep), jnp.float32).at[0, :embed_size].set(b_lin)
    gamma = jnp.ones((1, ep), jnp.float32)                # BN gamma=1 / beta=0 at init
    beta = jnp.zeros((1, ep), jnp.float32)
    return dict(w_pack=w_pack, w_lin=w_lin_p, b_lin=b_lin_p, gamma=gamma, beta=beta)


@functools.partial(jax.jit, static_argnums=(2,))
def _forward(images_nchw, params, embed_size):
    kp = params["w_pack"].shape[0]
    patches, hw, tile_m = _im2col_patches(images_nchw, kp)
    pooled = _conv_pool_call(patches, params["w_pack"], hw, tile_m)
    out = _linear_bn_call(pooled, params["w_lin"], params["b_lin"],
                          params["gamma"], params["beta"])
    return out[:, :embed_size]


def encoder_cnn_forward(images_nchw, params, embed_size):
    """images: [B, C, H, W] f32 -> features [B, embed_size] f32 (BN training mode)."""
    # PyTorch BatchNorm1d in training mode requires >1 value per channel.
    assert images_nchw.shape[0] > 1, "BatchNorm1d training-mode forward needs batch > 1"
    return _forward(images_nchw, params, embed_size)


def _reference(images_nchw, params, embed_size):
    """Pure-JAX reference on the same packed tensors (f32 math)."""
    kp = params["w_pack"].shape[0]
    patches, hw, _ = _im2col_patches(images_nchw, kp)
    fmap = jnp.maximum(
        jnp.einsum("bmk,kc->bmc", patches.astype(jnp.float32),
                   params["w_pack"].astype(jnp.float32)), 0.0)
    pooled = jnp.sum(fmap, axis=1) / hw
    y = pooled @ params["w_lin"] + params["b_lin"]
    mu = jnp.mean(y, axis=0, keepdims=True)
    var = jnp.mean(jnp.square(y - mu), axis=0, keepdims=True)
    out = (y - mu) * jax.lax.rsqrt(var + EPS) * params["gamma"] + params["beta"]
    return out[:, :embed_size]


if __name__ == "__main__":
    key = jax.random.PRNGKey(0)
    k_img, k_par = jax.random.split(key)

    batch, chans, spatial = 2, 3, 16
    embed_size = 32

    images = jax.random.normal(k_img, (batch, chans, spatial, spatial), jnp.float32)
    params = init_params(k_par, in_channels=chans, embed_size=embed_size)

    out = jax.block_until_ready(encoder_cnn_forward(images, params, embed_size))
    ref = jax.block_until_ready(_reference(images, params, embed_size))

    assert out.shape == (batch, embed_size), out.shape
    assert bool(jnp.all(jnp.isfinite(out)))
    assert float(jnp.max(jnp.abs(out - ref))) < 5e-2, float(jnp.max(jnp.abs(out - ref)))
    print("KERNEL_OK")
</pallas_src>

<mosaic_0001>
module attributes {stable_mosaic.version = 11 : i64} {
  func.func @_linear_bn_kernel(%arg0: i32, %arg1: memref<2x128xf32, #tpu.memory_space<vmem>>, %arg2: memref<128x128xf32, #tpu.memory_space<vmem>>, %arg3: memref<1x128xf32, #tpu.memory_space<vmem>>, %arg4: memref<1x128xf32, #tpu.memory_space<vmem>>, %arg5: memref<1x128xf32, #tpu.memory_space<vmem>>, %arg6: memref<2x128xf32, #tpu.memory_space<vmem>>) attributes {dimension_semantics = [#tpu.dimension_semantics<arbitrary>], iteration_bounds = array<i64: 1>, scalar_prefetch = 0 : i64, scratch_operands = 0 : i64, tpu.core_type = #tpu.core_type<tc>, window_params = [{pipeline_mode = #tpu.pipeline_mode<synchronous>, transform_indices = @transform_0, window_bounds = array<i64: 2, 128>}, {pipeline_mode = #tpu.pipeline_mode<synchronous>, transform_indices = @transform_1, window_bounds = array<i64: 128, 128>}, {pipeline_mode = #tpu.pipeline_mode<synchronous>, transform_indices = @transform_2, window_bounds = array<i64: 1, 128>}, {pipeline_mode = #tpu.pipeline_mode<synchronous>, transform_indices = @transform_3, window_bounds = array<i64: 1, 128>}, {pipeline_mode = #tpu.pipeline_mode<synchronous>, transform_indices = @transform_4, window_bounds = array<i64: 1, 128>}, {pipeline_mode = #tpu.pipeline_mode<synchronous>, transform_indices = @transform_5, window_bounds = array<i64: 2, 128>}]} {
    %c0 = arith.constant 0 : index
    %c0_0 = arith.constant 0 : index
    %0 = vector.load %arg1[%c0, %c0_0] : memref<2x128xf32, #tpu.memory_space<vmem>>, vector<2x128xf32>
    %c0_1 = arith.constant 0 : index
    %c0_2 = arith.constant 0 : index
    %1 = vector.load %arg2[%c0_1, %c0_2] : memref<128x128xf32, #tpu.memory_space<vmem>>, vector<128x128xf32>
    %cst = arith.constant dense<0.000000e+00> : vector<2x128xf32>
    %2 = tpu.matmul %0, %1, %cst {dimension_numbers = #tpu.dot_dimension_numbers<[1], [0], [0], [1], [0, 0, 1, 1], [], []>} : vector<2x128xf32>, vector<128x128xf32>, vector<2x128xf32> -> vector<2x128xf32>
    %c0_3 = arith.constant 0 : index
    %c0_4 = arith.constant 0 : index
    %3 = vector.load %arg3[%c0_3, %c0_4] : memref<1x128xf32, #tpu.memory_space<vmem>>, vector<1x128xf32>
    %4 = vector.broadcast %3 : vector<1x128xf32> to vector<2x128xf32>
    %5 = arith.addf %2, %4 : vector<2x128xf32>
    %cst_5 = arith.constant dense<0.000000e+00> : vector<128xf32>
    %6 = vector.multi_reduction <add>, %5, %cst_5 [0] : vector<2x128xf32> to vector<128xf32>
    %7 = vector.shape_cast %6 : vector<128xf32> to vector<1x128xf32>
    %cst_6 = arith.constant 2.000000e+00 : f32
    %8 = vector.broadcast %cst_6 : f32 to vector<1x128xf32>
    %9 = arith.divf %7, %8 : vector<1x128xf32>
    %10 = vector.broadcast %9 : vector<1x128xf32> to vector<2x128xf32>
    %11 = arith.subf %5, %10 : vector<2x128xf32>
    %12 = arith.mulf %11, %11 : vector<2x128xf32>
    %cst_7 = arith.constant dense<0.000000e+00> : vector<128xf32>
    %13 = vector.multi_reduction <add>, %12, %cst_7 [0] : vector<2x128xf32> to vector<128xf32>
    %14 = vector.shape_cast %13 : vector<128xf32> to vector<1x128xf32>
    %cst_8 = arith.constant 2.000000e+00 : f32
    %15 = vector.broadcast %cst_8 : f32 to vector<1x128xf32>
    %16 = arith.divf %14, %15 : vector<1x128xf32>
    %17 = vector.broadcast %9 : vector<1x128xf32> to vector<2x128xf32>
    %18 = arith.subf %5, %17 : vector<2x128xf32>
    %cst_9 = arith.constant 9.99999974E-6 : f32
    %19 = vector.broadcast %cst_9 : f32 to vector<1x128xf32>
    %20 = arith.addf %16, %19 : vector<1x128xf32>
    %21 = math.rsqrt %20 : vector<1x128xf32>
    %22 = vector.broadcast %21 : vector<1x128xf32> to vector<2x128xf32>
    %23 = arith.mulf %18, %22 : vector<2x128xf32>
    %c0_10 = arith.constant 0 : index
    %c0_11 = arith.constant 0 : index
    %24 = vector.load %arg4[%c0_10, %c0_11] : memref<1x128xf32, #tpu.memory_space<vmem>>, vector<1x128xf32>
    %25 = vector.broadcast %24 : vector<1x128xf32> to vector<2x128xf32>
    %26 = arith.mulf %23, %25 : vector<2x128xf32>
    %c0_12 = arith.constant 0 : index
    %c0_13 = arith.constant 0 : index
    %27 = vector.load %arg5[%c0_12, %c0_13] : memref<1x128xf32, #tpu.memory_space<vmem>>, vector<1x128xf32>
    %28 = vector.broadcast %27 : vector<1x128xf32> to vector<2x128xf32>
    %29 = arith.addf %26, %28 : vector<2x128xf32>
    %c0_14 = arith.constant 0 : index
    %c0_15 = arith.constant 0 : index
    %30 = vector.load %arg6[%c0_14, %c0_15] : memref<2x128xf32, #tpu.memory_space<vmem>>, vector<2x128xf32>
    tpu.vector_store %arg6[%c0_14, %c0_15], %29 {strides = array<i32>} : memref<2x128xf32, #tpu.memory_space<vmem>>, vector<2x128xf32>,
    return
  }
  func.func @transform_0(%arg0: i32) -> (i32, i32) {
    %c0_i32 = arith.constant 0 : i32
    %c0_i32_0 = arith.constant 0 : i32
    %c0_i32_1 = arith.constant 0 : i32
    return %c0_i32, %c0_i32_0 : i32, i32
  }
  func.func @transform_1(%arg0: i32) -> (i32, i32) {
    %c0_i32 = arith.constant 0 : i32
    %c0_i32_0 = arith.constant 0 : i32
    %c0_i32_1 = arith.constant 0 : i32
    return %c0_i32, %c0_i32_0 : i32, i32
  }
  func.func @transform_2(%arg0: i32) -> (i32, i32) {
    %c0_i32 = arith.constant 0 : i32
    %c0_i32_0 = arith.constant 0 : i32
    %c0_i32_1 = arith.constant 0 : i32
    return %c0_i32, %c0_i32_0 : i32, i32
  }
  func.func @transform_3(%arg0: i32) -> (i32, i32) {
    %c0_i32 = arith.constant 0 : i32
    %c0_i32_0 = arith.constant 0 : i32
    %c0_i32_1 = arith.constant 0 : i32
    return %c0_i32, %c0_i32_0 : i32, i32
  }
  func.func @transform_4(%arg0: i32) -> (i32, i32) {
    %c0_i32 = arith.constant 0 : i32
    %c0_i32_0 = arith.constant 0 : i32
    %c0_i32_1 = arith.constant 0 : i32
    return %c0_i32, %c0_i32_0 : i32, i32
  }
  func.func @transform_5(%arg0: i32) -> (i32, i32) {
    %c0_i32 = arith.constant 0 : i32
    %c0_i32_0 = arith.constant 0 : i32
    %c0_i32_1 = arith.constant 0 : i32
    return %c0_i32, %c0_i32_0 : i32, i32
  }
}

module attributes {stable_mosaic.version = 11 : i64} {
  func.func @_conv_pool_kernel(%arg0: i32, %arg1: i32, %arg2: memref<1x256x32xbf16, #tpu.memory_space<vmem>>, %arg3: memref<32x128xbf16, #tpu.memory_space<vmem>>, %arg4: memref<1x1x128xf32, #tpu.memory_space<vmem>>) attributes {dimension_semantics = [#tpu.dimension_semantics<parallel>, #tpu.dimension_semantics<arbitrary>], iteration_bounds = array<i64: 2, 1>, scalar_prefetch = 0 : i64, scratch_operands = 0 : i64, tpu.core_type = #tpu.core_type<tc>, window_params = [{transform_indices = @transform_0, window_bounds = array<i64: 1, 256, 32>}, {pipeline_mode = #tpu.pipeline_mode<synchronous>, transform_indices = @transform_1, window_bounds = array<i64: 32, 128>}, {transform_indices = @transform_2, window_bounds = array<i64: 1, 1, 128>}]} {
    %c0_i32 = arith.constant 0 : i32
    %0 = arith.cmpi eq, %arg1, %c0_i32 : i32
    %1 = arith.extui %0 : i1 to i32
    %c0_i32_0 = arith.constant 0 : i32
    %2 = arith.cmpi ne, %1, %c0_i32_0 : i32
    scf.if %2 {
      %cst_15 = arith.constant 0.000000e+00 : f32
      %18 = vector.broadcast %cst_15 : f32 to vector<1x1x128xf32>
      %c0_16 = arith.constant 0 : index
      %c0_17 = arith.constant 0 : index
      %c0_18 = arith.constant 0 : index
      %19 = vector.load %arg4[%c0_16, %c0_17, %c0_18] : memref<1x1x128xf32, #tpu.memory_space<vmem>>, vector<1x1x128xf32>
      tpu.vector_store %arg4[%c0_16, %c0_17, %c0_18], %18 {strides = array<i32>} : memref<1x1x128xf32, #tpu.memory_space<vmem>>, vector<1x1x128xf32>,
    } else {
    }
    %c0 = arith.constant 0 : index
    %c0_1 = arith.constant 0 : index
    %c0_2 = arith.constant 0 : index
    %3 = vector.load %arg2[%c0, %c0_1, %c0_2] : memref<1x256x32xbf16, #tpu.memory_space<vmem>>, vector<1x256x32xbf16>
    %4 = vector.shape_cast %3 : vector<1x256x32xbf16> to vector<256x32xbf16>
    %c0_3 = arith.constant 0 : index
    %c0_4 = arith.constant 0 : index
    %5 = vector.load %arg3[%c0_3, %c0_4] : memref<32x128xbf16, #tpu.memory_space<vmem>>, vector<32x128xbf16>
    %cst = arith.constant dense<0.000000e+00> : vector<256x128xf32>
    %6 = tpu.matmul %4, %5, %cst {dimension_numbers = #tpu.dot_dimension_numbers<[1], [0], [0], [1], [0, 0, 1, 1], [], []>} : vector<256x32xbf16>, vector<32x128xbf16>, vector<256x128xf32> -> vector<256x128xf32>
    %cst_5 = arith.constant 0.000000e+00 : f32
    %7 = vector.broadcast %cst_5 : f32 to vector<256x128xf32>
    %8 = arith.maximumf %6, %7 : vector<256x128xf32>
    %cst_6 = arith.constant dense<0.000000e+00> : vector<128xf32>
    %9 = vector.multi_reduction <add>, %8, %cst_6 [0] : vector<256x128xf32> to vector<128xf32>
    %10 = vector.shape_cast %9 : vector<128xf32> to vector<1x128xf32>
    %c0_7 = arith.constant 0 : index
    %c0_8 = arith.constant 0 : index
    %c0_9 = arith.constant 0 : index
    %11 = vector.load %arg4[%c0_7, %c0_8, %c0_9] : memref<1x1x128xf32, #tpu.memory_space<vmem>>, vector<1x1x128xf32>
    %12 = vector.shape_cast %10 : vector<1x128xf32> to vector<1x1x128xf32>
    %13 = arith.addf %11, %12 : vector<1x1x128xf32>
    %c0_10 = arith.constant 0 : index
    %c0_11 = arith.constant 0 : index
    %c0_12 = arith.constant 0 : index
    %14 = vector.load %arg4[%c0_10, %c0_11, %c0_12] : memref<1x1x128xf32, #tpu.memory_space<vmem>>, vector<1x1x128xf32>
    tpu.vector_store %arg4[%c0_10, %c0_11, %c0_12], %13 {strides = array<i32>} : memref<1x1x128xf32, #tpu.memory_space<vmem>>, vector<1x1x128xf32>,
    %c0_i32_13 = arith.constant 0 : i32
    %15 = arith.cmpi eq, %arg1, %c0_i32_13 : i32
    %16 = arith.extui %15 : i1 to i32
    %c0_i32_14 = arith.constant 0 : i32
    %17 = arith.cmpi ne, %16, %c0_i32_14 : i32
    scf.if %17 {
      %c0_15 = arith.constant 0 : index
      %c0_16 = arith.constant 0 : index
      %c0_17 = arith.constant 0 : index
      %18 = vector.load %arg4[%c0_15, %c0_16, %c0_17] : memref<1x1x128xf32, #tpu.memory_space<vmem>>, vector<1x1x128xf32>
      %cst_18 = arith.constant 3.906250e-03 : f32
      %19 = vector.broadcast %cst_18 : f32 to vector<1x1x128xf32>
      %20 = arith.mulf %18, %19 : vector<1x1x128xf32>
      %c0_19 = arith.constant 0 : index
      %c0_20 = arith.constant 0 : index
      %c0_21 = arith.constant 0 : index
      %21 = vector.load %arg4[%c0_19, %c0_20, %c0_21] : memref<1x1x128xf32, #tpu.memory_space<vmem>>, vector<1x1x128xf32>
      tpu.vector_store %arg4[%c0_19, %c0_20, %c0_21], %20 {strides = array<i32>} : memref<1x1x128xf32, #tpu.memory_space<vmem>>, vector<1x1x128xf32>,
    } else {
    }
    return
  }
  func.func @transform_0(%arg0: i32, %arg1: i32) -> (i32, i32, i32) {
    %c0_i32 = arith.constant 0 : i32
    %c0_i32_0 = arith.constant 0 : i32
    return %arg0, %arg1, %c0_i32 : i32, i32, i32
  }
  func.func @transform_1(%arg0: i32, %arg1: i32) -> (i32, i32) {
    %c0_i32 = arith.constant 0 : i32
    %c0_i32_0 = arith.constant 0 : i32
    %c0_i32_1 = arith.constant 0 : i32
    return %c0_i32, %c0_i32_0 : i32, i32
  }
  func.func @transform_2(%arg0: i32, %arg1: i32) -> (i32, i32, i32) {
    %c0_i32 = arith.constant 0 : i32
    %c0_i32_0 = arith.constant 0 : i32
    %c0_i32_1 = arith.constant 0 : i32
    return %arg0, %c0_i32, %c0_i32_0 : i32, i32, i32
  }
}

</mosaic_0001>

<bundles_post_ra>
// kernel: _forward.3
= control target key start
LH: loop header
LB: loop body
LE: loop exit
PB: predicated region body
PF: predicated region fallthrough
CT: control target
= control target key end

     0   :  { %s259_s0 = inlined_call_operand.vmem [shape: f32[2,128], index: 0, kind: input, shape index: {}]   ;;  %s260_s1 = inlined_call_operand.vmem [shape: f32[128,128], index: 1, kind: input, shape index: {}]   ;;  %s261_s2 = inlined_call_operand.vmem [shape: f32[1,128], index: 2, kind: input, shape index: {}]   ;;  %s262_s3 = inlined_call_operand.vmem [shape: f32[1,128], index: 3, kind: input, shape index: {}]   ;;  %s263_s4 = inlined_call_operand.vmem [shape: f32[1,128], index: 4, kind: input, shape index: {}]   ;;  %s264_s5 = inlined_call_operand.hbm [shape: f32[2,128], index: 5, kind: output, shape index: {}]  }
   0x1   :  { %v37_v0 = vld [vmem:[%s260_s1 + $0x78] sm:$0xff]  ;;  %v36_v1 = vld [vmem:[%s260_s1 + $0x70] sm:$0xff]  ;;  %v35_v2 = vld [vmem:[%s260_s1 + $0x68] sm:$0xff] }
   0x2   :  { %42 = vmatpush.msra.mxu0 %v37_v0  ;;  %v34_v3 = vld [vmem:[%s260_s1 + $0x60] sm:$0xff]  ;;  %v33_v4 = vld [vmem:[%s260_s1 + $0x58] sm:$0xff] }
   0x4   :  { %43 = vmatpush.msra.mxu0 %v36_v1 }
   0x6   :  { %44 = vmatpush.msra.mxu0 %v35_v2 }
   0x7   :  { %10 = vsyncpa [#allocation3], 0  ;;  %v32_v5 = vld [vmem:[%s260_s1 + $0x50] sm:$0xff]  ;;  %v31_v6 = vld [vmem:[%s260_s1 + $0x48] sm:$0xff]  ;;  %v162_v17 = vmov 2.0   ;;  %vm62_vm0 = vcmask 1041408  }
   0x8   :  { %45 = vmatpush.msra.mxu0 %v34_v3  ;;  %v30_v7 = vld [vmem:[%s260_s1 + $0x40] sm:$0xff]  ;;  %v29_v8 = vld [vmem:[%s260_s1 + $0x38] sm:$0xff]  ;;  %v28_v9 = vld [vmem:[%s260_s1 + $0x30] sm:$0xff]  ;;  %132 = vrcp.f32 %v162_v17  ;;  %s163_s30 = smov [#allocation2]   ;;  %s118_s9 = sshll.u32 %s264_s5, 4  ;;  %s119_s9 = int_to_ptr.hbm [resolvable:$true] %s118_s9 }
   0x9   :  { %v27_v10 = vld [vmem:[%s260_s1 + $0x28] sm:$0xff]  ;;  %v26_v11 = vld [vmem:[%s260_s1 + $0x20] sm:$0xff]  ;;  %v25_v12 = vld [vmem:[%s260_s1 + $0x18] sm:$0xff]  ;;  %s116_s6 = sshll.u32 %s163_s30, 4  ;;  %s117_s6 = int_to_ptr.vmem [resolvable:$true] %s116_s6 }
   0xa   :  { %46 = vmatpush.msra.mxu0 %v33_v4  ;;  %v24_v13 = vld [vmem:[%s260_s1 + $0x10] sm:$0xff]  ;;  %v23_v14 = vld [vmem:[%s260_s1 + $0x8] sm:$0xff]  ;;  %v22_v15 = vld [vmem:[%s260_s1] sm:$0xff] }
   0xb   :  { %v21_v16 = vld [vmem:[%s259_s0] sm:$0x3] }
   0xc   :  { %47 = vmatpush.msra.mxu0 %v32_v5  ;;  %v129_v19 = vld [vmem:[%s261_s2] ss:$0 sm:$0xff] }
   0xd   :  { %v130_v52 = vld [vmem:[%s262_s3] ss:$0 sm:$0xff] }
   0xe   :  { %48 = vmatpush.msra.mxu0 %v31_v6  ;;  %v133_v18 = vpop.eup %132  ;;  %v131_v55 = vld [vmem:[%s263_s4] ss:$0 sm:$0xff] }
   0xf   :  { %v71_v20 = vmul.f32 2.0, %v133_v18  ;;  %vm75_vm1 = vweird.f32 %v133_v18 }
  0x10   :  { %49 = vmatpush.msra.mxu0 %v30_v7 }
  0x11   :  { %v72_v23 = vsub.f32 1.0, %v71_v20 }
  0x12   :  { %50 = vmatpush.msra.mxu0 %v29_v8 }
  0x13   :  { %v73_v26 = vmul.f32 %v133_v18, %v72_v23 }
  0x14   :  { %51 = vmatpush.msra.mxu0 %v28_v9 }
  0x15   :  { %v74_v29 = vadd.f32 %v133_v18, %v73_v26 }
  0x16   :  { %52 = vmatpush.msra.mxu0 %v27_v10 }
  0x17   :  { %v76_v32 = vsel %vm75_vm1, %v133_v18, %v74_v29 }
  0x18   :  { %53 = vmatpush.msra.mxu0 %v26_v11 }
  0x1a   :  { %54 = vmatpush.msra.mxu0 %v25_v12 }
  0x1c   :  { %55 = vmatpush.msra.mxu0 %v24_v13 }
  0x1e   :  { %56 = vmatpush.msra.mxu0 %v23_v14 }
  0x20   :  { %57 = vmatpush.msra.mxu0 %v22_v15 }
  0x21   :  { %58 = vmatmul.f32.vlgmr.msra.gmra.mxu0 %v21_v16 }
  0x9e   :  { %v59_v21 = vpop.f32.mrf.mxu0 }
  0x9f   :  { %v60_v22 = vadd.f32 %v129_v19, %v59_v21 }
  0xa1   :  { %v63_v24 = vsel %vm62_vm0, %v60_v22, 0.0 }
  0xa2   :  { %v64_v25 = vrot.slane %v63_v24, 4 }
  0xa4   :  { %v65_v27 = vadd.f32 %v64_v25, %v63_v24 }
  0xa6   :  { %v66_v28 = vrot.slane %v65_v27, 2 }
  0xa8   :  { %v67_v30 = vadd.f32 %v66_v28, %v65_v27 }
  0xaa   :  { %v68_v31 = vrot.slane %v67_v30, 1 }
  0xac   :  { %v69_v33 = vadd.f32 %v68_v31, %v67_v30 }
  0xae   :  { %v77_v34 = vmul.f32 %v76_v32, %v69_v33 }
  0xb0   :  { %v78_v35 = vsub.f32 %v60_v22, %v77_v34 }
  0xb2   :  { %v79_v36 = vmul.f32 %v78_v35, %v78_v35 }
  0xb4   :  { %v80_v37 = vsel %vm62_vm0, %v79_v36, 0.0 }
  0xb5   :  { %v81_v38 = vrot.slane %v80_v37, 4 }
  0xb7   :  { %v82_v39 = vadd.f32 %v81_v38, %v80_v37 }
  0xb9   :  { %v83_v40 = vrot.slane %v82_v39, 2 }
  0xbb   :  { %v84_v41 = vadd.f32 %v83_v40, %v82_v39 }
  0xbd   :  { %v85_v42 = vrot.slane %v84_v41, 1 }
  0xbf   :  { %v86_v43 = vadd.f32 %v85_v42, %v84_v41 }
  0xc1   :  { %v87_v44 = vmul.f32 %v86_v43, %v76_v32 }
  0xc3   :  { %v88_v45 = vadd.f32 1e-05, %v87_v44 }
  0xc5   :  { %134 = vrsqrt.f32 %v88_v45  ;;  %vm95_vm3 = vweird.f32 %v88_v45 }
  0xcb   :  { %v135_v46 = vpop.eup %134 }
  0xcc   :  { %v90_v47 = vmul.f32 %v135_v46, %v88_v45  ;;  %vm96_vm2 = vweird.f32 %v135_v46 }
  0xcd   :  { %vm97_vm4 = vmor %vm95_vm3, %vm96_vm2 }
  0xce   :  { %v91_v48 = vmul.f32 %v135_v46, %v90_v47 }
  0xd0   :  { %v92_v49 = vmul.f32 0.5, %v91_v48 }
  0xd2   :  { %v93_v50 = vsub.f32 1.5, %v92_v49 }
  0xd4   :  { %v94_v51 = vmul.f32 %v135_v46, %v93_v50 }
  0xd6   :  { %v98_v53 = vsel %vm97_vm4, %v135_v46, %v94_v51 }
  0xd7   :  { %v99_v54 = vmul.f32 %v98_v53, %v78_v35 }
  0xd9   :  { %v104_v56 = vmul.f32 %v130_v52, %v99_v54 }
  0xdb   :  { %v109_v57 = vadd.f32 %v131_v55, %v104_v56 }
  0xdd   :  { %110 = vst [vmem:[#allocation2] sm:$0x3] %v109_v57 }
  0xde   :  { %121 = dma.vmem_to_hbm [thread:$0]  %s117_s6, 32, %s119_s9, [#allocation3]  }
  0xdf   :  { %160 = dma.done.wait [#allocation3], 32  }
  0xe0   :  { %161 = vsyncadd [#allocation3], 4294967264 }
  0xe1   :  { %126 = vsyncpa [#allocation3], 1 }

// kernel: _forward.2
= control target key start
LH: loop header
LB: loop body
LE: loop exit
PB: predicated region body
PF: predicated region fallthrough
CT: control target
= control target key end

     0   :  { %s766_s9 = smov 0   ;;  %s768_s10 = smov 0   ;;  %s856_s0 = inlined_call_operand.vmem [shape: bf16[2,256,32], index: 0, kind: input, shape index: {}]   ;;  %s857_s1 = inlined_call_operand.vmem [shape: bf16[32,128], index: 1, kind: input, shape index: {}]   ;;  %s858_s2 = inlined_call_operand.vmem [shape: f32[2,1,128], index: 2, kind: output, shape index: {}]  }
   0x1   :  { %s770_s11 = smov 0  }
   0x2 LB: > { %s24_s12 = sadd.s32 1, %s744_s10  ;;  %p583_p0 = scmp.ge.s32.totalorder %s748_s11, 1  ;;  %s748_s11 = sphi %s770_s11, %s12_s11   ;;  %s744_s10 = sphi %s768_s10, %s860_s10   ;;  %s740_s9 = sphi %s766_s9, %s859_s9  }
   0x3   : > { %p26_p1 = scmp.ge.s32.totalorder %s24_s12, 2  ;;  %p131_p2 = scmp.lt.s32.totalorder %s748_s11, 3 }
   0x5   : > { %s862_s12 = smov (%p26_p1, %s24_s12), 0  ;;  %p132_p3 = pnand %p583_p0, %p131_p2 }
   0x6   : > { %p156_p4 = scmp.lt.s32.totalorder (!%p132_p3), %s740_s9, 1 }
   0x7   : > { %135 = sbr.rel (%p132_p3) target bundleno = 279 (0x117), region = 28 }
   0xc   : > { %v694_v0 = vld [vmem:[%s857_s1 + $0x8] sm:$0xff]  ;;  %v693_v1 = vld [vmem:[%s857_s1] sm:$0xff]  ;;  %s864_s9 = smov (!%p156_p4, %s740_s9), 1  ;;  %vm302_vm0 = vcmask 261120  }
   0xd   : > { %357 = vmatpush.bf16.msra.mxu0 %v694_v0  ;;  %695 = vmatpush.bf16.msra.mxu1 %v694_v0  ;;  %s676_s17 = sshll.u32 %s864_s9, 7  ;;  %s838_s23 = scalar_lea.vmem %s858_s2, %s864_s9 }
   0xe   : > { %696 = vmatpush.bf16.msra.mxu2 %v694_v0  ;;  %697 = vmatpush.bf16.msra.mxu3 %v694_v0  ;;  %s796_s20 = scalar_lea.vmem %s856_s0, %s676_s17 }
   0xf   : > { %v677_v2 = vld [vmem:[%s796_s20] sm:$0xff]  ;;  %v678_v6 = vld [vmem:[%s796_s20 + $0x8] sm:$0xff]  ;;  %v679_v10 = vld [vmem:[%s796_s20 + $0x10] sm:$0xff] }
  0x10   : > { %v681_v3 = vld [vmem:[%s796_s20 + $0x20] sm:$0xff]  ;;  %v682_v7 = vld [vmem:[%s796_s20 + $0x28] sm:$0xff]  ;;  %v683_v11 = vld [vmem:[%s796_s20 + $0x30] sm:$0xff] }
  0x11   : > { %358 = vmatpush.bf16.msra.mxu0 %v693_v1  ;;  %698 = vmatpush.bf16.msra.mxu1 %v693_v1  ;;  %v685_v4 = vld [vmem:[%s796_s20 + $0x40] sm:$0xff]  ;;  %v686_v8 = vld [vmem:[%s796_s20 + $0x48] sm:$0xff]  ;;  %v687_v12 = vld [vmem:[%s796_s20 + $0x50] sm:$0xff] }
  0x12   : > { %699 = vmatpush.bf16.msra.mxu2 %v693_v1  ;;  %700 = vmatpush.bf16.msra.mxu3 %v693_v1  ;;  %v689_v5 = vld [vmem:[%s796_s20 + $0x60] sm:$0xff]  ;;  %v690_v9 = vld [vmem:[%s796_s20 + $0x68] sm:$0xff]  ;;  %v691_v13 = vld [vmem:[%s796_s20 + $0x70] sm:$0xff] }
  0x13   : > { %v680_v14 = vld [vmem:[%s796_s20 + $0x18] sm:$0xff] }
  0x14   : > { %658 = vmatmul.msk.bf16.vlgmr.msra.gmra.mxu0 %vm302_vm0, %v677_v2  ;;  %662 = vmatmul.msk.bf16.vlgmr.msra.gmra.mxu1 %vm302_vm0, %v681_v3  ;;  %v684_v15 = vld [vmem:[%s796_s20 + $0x38] sm:$0xff] }
  0x15   : > { %666 = vmatmul.msk.bf16.vlgmr.msra.gmra.mxu2 %vm302_vm0, %v685_v4  ;;  %670 = vmatmul.msk.bf16.vlgmr.msra.gmra.mxu3 %vm302_vm0, %v689_v5  ;;  %v688_v16 = vld [vmem:[%s796_s20 + $0x58] sm:$0xff] }
  0x16   : > { %v692_v17 = vld [vmem:[%s796_s20 + $0x78] sm:$0xff] }
  0x24   : > { %659 = vmatmul.msk.bf16.gmra.mxu0 %vm302_vm0, %v678_v6  ;;  %663 = vmatmul.msk.bf16.gmra.mxu1 %vm302_vm0, %v682_v7 }
  0x25   : > { %667 = vmatmul.msk.bf16.gmra.mxu2 %vm302_vm0, %v686_v8  ;;  %671 = vmatmul.msk.bf16.gmra.mxu3 %vm302_vm0, %v690_v9 }
  0x34   : > { %660 = vmatmul.msk.bf16.gmra.mxu0 %vm302_vm0, %v679_v10  ;;  %664 = vmatmul.msk.bf16.gmra.mxu1 %vm302_vm0, %v683_v11  ;;  %v750_v11 = vmov 0.0  }
  0x35   : > { %668 = vmatmul.msk.bf16.gmra.mxu2 %vm302_vm0, %v687_v12  ;;  %672 = vmatmul.msk.bf16.gmra.mxu3 %vm302_vm0, %v691_v13  ;;  %173 = vst [vmem:[%s838_s23] sm:$0x1] %v750_v11 }
  0x44   : > { %661 = vmatmul.msk.bf16.gmra.mxu0 %vm302_vm0, %v680_v14  ;;  %665 = vmatmul.msk.bf16.gmra.mxu1 %vm302_vm0, %v684_v15 }
  0x45   : > { %669 = vmatmul.msk.bf16.gmra.mxu2 %vm302_vm0, %v688_v16  ;;  %673 = vmatmul.msk.bf16.gmra.mxu3 %vm302_vm0, %v692_v17 }
  0x91   : > { %v360_v18 = vpop.f32.mrf.mxu0  ;;  %v380_v19 = vpop.f32.mrf.mxu1 }
  0x92   : > { %v440_v35 = vmax.f32 %v360_v18, 0.0  ;;  %v448_v54 = vmax.f32 %v380_v19, 0.0 }
  0x98   : > { %v400_v23 = vpop.f32.mrf.mxu2  ;;  %v830_v29 = vpop.f32.mrf.mxu3 }
  0x99   : > { %v362_v20 = vpop.f32.mrf.mxu0  ;;  %v382_v21 = vpop.f32.mrf.mxu1  ;;  %v456_v12 = vmax.f32 %v400_v23, 0.0  ;;  %v464_v23 = vmax.f32 %v830_v29, 0.0 }
  0x9a   : > { %v441_v34 = vmax.f32 %v362_v20, 0.0  ;;  %v449_v57 = vmax.f32 %v382_v21, 0.0 }
  0x9c   : > { %v472_v38 = vadd.f32 %v441_v34, %v440_v35 }
  0xa0   : > { %v402_v26 = vpop.f32.mrf.mxu2  ;;  %v832_v33 = vpop.f32.mrf.mxu3 }
  0xa1   : > { %v365_v22 = vpop.f32.mrf.mxu0  ;;  %v385_v24 = vpop.f32.mrf.mxu1  ;;  %v457_v15 = vmax.f32 %v402_v26, 0.0  ;;  %v465_v26 = vmax.f32 %v832_v33, 0.0 }
  0xa2   : > { %v442_v36 = vmax.f32 %v365_v22, 0.0  ;;  %v450_v60 = vmax.f32 %v385_v24, 0.0 }
  0xa4   : > { %v473_v41 = vadd.f32 %v472_v38, %v442_v36 }
  0xa8   : > { %v405_v30 = vpop.f32.mrf.mxu2  ;;  %v425_v46 = vpop.f32.mrf.mxu3 }
  0xa9   : > { %v367_v25 = vpop.f32.mrf.mxu0  ;;  %v387_v27 = vpop.f32.mrf.mxu1  ;;  %v458_v17 = vmax.f32 %v405_v30, 0.0 }
  0xaa   : > { %v443_v39 = vmax.f32 %v367_v25, 0.0  ;;  %v451_v62 = vmax.f32 %v387_v27, 0.0 }
  0xac   : > { %v474_v44 = vadd.f32 %v473_v41, %v443_v39  ;;  %v466_v39 = vmax.f32 %v425_v46, 0.0 }
  0xb0   : > { %v407_v37 = vpop.f32.mrf.mxu2  ;;  %v427_v59 = vpop.f32.mrf.mxu3 }
  0xb1   : > { %v370_v28 = vpop.f32.mrf.mxu0  ;;  %v390_v32 = vpop.f32.mrf.mxu1  ;;  %v459_v19 = vmax.f32 %v407_v37, 0.0 }
  0xb2   : > { %v444_v42 = vmax.f32 %v370_v28, 0.0  ;;  %v452_v1 = vmax.f32 %v390_v32, 0.0 }
  0xb4   : > { %v475_v47 = vadd.f32 %v474_v44, %v444_v42 }
  0xb8   : > { %v410_v51 = vpop.f32.mrf.mxu2  ;;  %v430_v8 = vpop.f32.mrf.mxu3 }
  0xb9   : > { %v372_v31 = vpop.f32.mrf.mxu0  ;;  %v392_v43 = vpop.f32.mrf.mxu1  ;;  %v460_v22 = vmax.f32 %v410_v51, 0.0  ;;  %v468_v42 = vmax.f32 %v430_v8, 0.0 }
  0xba   : > { %v445_v45 = vmax.f32 %v372_v31, 0.0  ;;  %v453_v3 = vmax.f32 %v392_v43, 0.0 }
  0xbc   : > { %v476_v49 = vadd.f32 %v475_v47, %v445_v45 }
  0xc0   : > { %v412_v0 = vpop.f32.mrf.mxu2  ;;  %v432_v21 = vpop.f32.mrf.mxu3 }
  0xc1   : > { %v375_v40 = vpop.f32.mrf.mxu0  ;;  %v395_v56 = vpop.f32.mrf.mxu1  ;;  %v461_v25 = vmax.f32 %v412_v0, 0.0  ;;  %v469_v44 = vmax.f32 %v432_v21, 0.0 }
  0xc2   : > { %v446_v48 = vmax.f32 %v375_v40, 0.0  ;;  %v454_v6 = vmax.f32 %v395_v56, 0.0  ;;  %v467_v40 = vmax.f32 %v427_v59, 0.0 }
  0xc4   : > { %v477_v52 = vadd.f32 %v476_v49, %v446_v48 }
  0xc8   : > { %v415_v14 = vpop.f32.mrf.mxu2  ;;  %v435_v38 = vpop.f32.mrf.mxu3 }
  0xc9   : > { %v377_v50 = vpop.f32.mrf.mxu0  ;;  %v397_v5 = vpop.f32.mrf.mxu1  ;;  %v462_v32 = vmax.f32 %v415_v14, 0.0  ;;  %v470_v29 = vmax.f32 %v435_v38, 0.0 }
  0xca   : > { %v447_v53 = vmax.f32 %v377_v50, 0.0  ;;  %v455_v10 = vmax.f32 %v397_v5, 0.0 }
  0xcc   : > { %v478_v55 = vadd.f32 %v477_v52, %v447_v53 }
  0xce   : > { %v479_v58 = vadd.f32 %v478_v55, %v448_v54  ;;  %v509_v55 = vld [vmem:[%s838_s23] sm:$0x1] }
  0xd0   : > { %v480_v61 = vadd.f32 %v479_v58, %v449_v57  ;;  %v417_v28 = vpop.f32.mrf.mxu2  ;;  %v437_v47 = vpop.f32.mrf.mxu3 }
  0xd1   : > { %v463_v35 = vmax.f32 %v417_v28, 0.0  ;;  %v471_v50 = vmax.f32 %v437_v47, 0.0 }
  0xd2   : > { %v481_v63 = vadd.f32 %v480_v61, %v450_v60 }
  0xd4   : > { %v482_v2 = vadd.f32 %v481_v63, %v451_v62 }
  0xd6   : > { %v483_v4 = vadd.f32 %v482_v2, %v452_v1 }
  0xd8   : > { %v484_v7 = vadd.f32 %v483_v4, %v453_v3 }
  0xda   : > { %v485_v9 = vadd.f32 %v484_v7, %v454_v6 }
  0xdc   : > { %v486_v13 = vadd.f32 %v485_v9, %v455_v10 }
  0xde   : > { %v487_v16 = vadd.f32 %v486_v13, %v456_v12 }
  0xe0   : > { %v488_v18 = vadd.f32 %v487_v16, %v457_v15 }
  0xe2   : > { %v489_v20 = vadd.f32 %v488_v18, %v458_v17 }
  0xe4   : > { %v490_v24 = vadd.f32 %v489_v20, %v459_v19 }
  0xe6   : > { %v491_v27 = vadd.f32 %v490_v24, %v460_v22 }
  0xe8   : > { %v492_v31 = vadd.f32 %v491_v27, %v461_v25 }
  0xea   : > { %v493_v34 = vadd.f32 %v492_v31, %v462_v32 }
  0xec   : > { %v494_v36 = vadd.f32 %v493_v34, %v463_v35 }
  0xee   : > { %v495_v30 = vadd.f32 %v494_v36, %v464_v23 }
  0xf0   : > { %v496_v37 = vadd.f32 %v495_v30, %v465_v26 }
  0xf2   : > { %v497_v41 = vadd.f32 %v496_v37, %v466_v39 }
  0xf4   : > { %v498_v43 = vadd.f32 %v497_v41, %v467_v40 }
  0xf6   : > { %v499_v45 = vadd.f32 %v498_v43, %v468_v42 }
  0xf8   : > { %v500_v48 = vadd.f32 %v499_v45, %v469_v44 }
  0xfa   : > { %v501_v49 = vadd.f32 %v500_v48, %v470_v29 }
  0xfc   : > { %v502_v51 = vadd.f32 %v501_v49, %v471_v50 }
  0xfe   : > { %v503_v33 = vrot.slane %v502_v51, 4 }
 0x100   : > { %v504_v52 = vadd.f32 %v503_v33, %v502_v51 }
 0x102   : > { %v505_v46 = vrot.slane %v504_v52, 2 }
 0x104   : > { %v506_v53 = vadd.f32 %v505_v46, %v504_v52 }
 0x106   : > { %v507_v54 = vrot.slane %v506_v53, 1 }
 0x108   : > { %v508_v56 = vadd.f32 %v507_v54, %v506_v53 }
 0x10a   : > { %v510_v57 = vadd.f32 %v509_v55, %v508_v56 }
 0x10c   : > { %511 = vst [vmem:[%s838_s23] sm:$0x1] %v510_v57 }
 0x113   : > { %v515_v58 = vld [vmem:[%s838_s23] sm:$0x1] }
 0x114   : > { %v516_v59 = vmul.f32 0.00390625, %v515_v58 }
 0x116   : > { %517 = vst [vmem:[%s838_s23] sm:$0x1] %v516_v59 }
 0x117 PF: > { %s12_s11 = sadd.s32 1, %s748_s11   ;;  %s859_s9 = smov %s744_s10 }
 0x118   : > { %p9_p5 = scmp.ge.s32.totalorder %s12_s11, 4   ;;  %s860_s10 = smov %s862_s12 }
 0x11a   :  { %11 = sbr.rel (!%p9_p5) target bundleno = 2 (0x2), region = 66 }

</bundles_post_ra>
